<compile_context>
chip_gen: v5e
topology: v5e:2x2
jax: 0.10.0
libtpu: 0.0.40
codegen_flags: <defaults>
</compile_context>

<pallas_src>
import functools

import jax
import jax.numpy as jnp
from jax import lax
from jax.experimental import pallas as pl
from jax.experimental.pallas import tpu as pltpu


def _mha_kernel(z_ref, wqkv_ref, bqkv_ref, wproj_ref, bproj_ref, o_ref, *,
                num_heads, d_h, n_valid):
    # z_ref:     (1, N, D)        bf16 activations for one batch element
    # wqkv_ref:  (3, H, D, d_h)   bf16 per-head QKV weights (leading head axis)
    # bqkv_ref:  (3, H, 1, d_h)   f32 biases
    # wproj_ref: (H, d_h, D)      bf16 per-head row-blocks of the output projection
    # bproj_ref: (1, D)           f32
    # o_ref:     (1, N, D)        f32 output
    n_pad = z_ref.shape[1]
    scale = float(d_h) ** -0.5

    z = z_ref[0]                                               # (N, D) bf16
    # Broadcast once (hoisted, not per-head) so q/k/v are plain batched matmuls
    # over a leading head axis — no lane slicing anywhere.
    zb = jnp.broadcast_to(z, (num_heads,) + z.shape)           # (H, N, D) bf16

    def _project(g):
        r = jnp.einsum("hnd,hdf->hnf", zb, wqkv_ref[g],
                       preferred_element_type=jnp.float32)     # f32 accumulate
        return r + bqkv_ref[g]                                 # (H, N, d_h) f32

    # Fold the 1/sqrt(d_h) scale into q: N*d_h multiplies instead of N*N.
    q = _project(0) * scale
    k = _project(1)
    v = _project(2)

    # Batched QK^T over the head axis; bf16 operands, f32 accumulation.
    s = jnp.einsum("hqf,hkf->hqk",
                   q.astype(jnp.bfloat16), k.astype(jnp.bfloat16),
                   preferred_element_type=jnp.float32)         # (H, N, N) f32

    if n_valid < n_pad:  # static: mask zero-padded key positions
        key_idx = lax.broadcasted_iota(jnp.int32, s.shape, dimension=2)
        s = jnp.where(key_idx < n_valid, s, -jnp.inf)

    # Numerically-stable softmax, all stats in f32 (no bf16 VPU/EUP dependence).
    s = s - jnp.max(s, axis=-1, keepdims=True)
    p = jnp.exp(s)
    p = p * pl.reciprocal(jnp.sum(p, axis=-1, keepdims=True), approx=True)

    # Batched P @ V; only p is cast to bf16 right before the matmul.
    o = jnp.einsum("hqk,hkf->hqf",
                   p.astype(jnp.bfloat16), v.astype(jnp.bfloat16),
                   preferred_element_type=jnp.float32)         # (H, N, d_h) f32

    # Fused output projection with per-head accumulation: each head multiplies its
    # (d_h, D) row-block of W_proj, then a cheap leading-axis reduce replaces the
    # old masked-store concat buffer entirely.
    out = jnp.einsum("hnf,hfe->hne",
                     o.astype(jnp.bfloat16), wproj_ref[...],
                     preferred_element_type=jnp.float32)       # (H, N, D) f32
    out = jnp.sum(out, axis=0) + bproj_ref[...]                # (N, D) f32
    o_ref[0] = out.astype(o_ref.dtype)


def multi_head_attention(z, wqkv, bqkv, wproj, bproj, *, num_heads):
    """JAX/Pallas equivalent of MultiHeadAttention.forward.

    z:     (B, N, D)
    wqkv:  (D, 3D)  (input-major; PyTorch's qkv.weight.T, columns ordered as
                     reshape(b, n, 3, H, d_h) expects)
    bqkv:  (3D,)
    wproj: (D, D)   (PyTorch's proj.weight.T)
    bproj: (D,)
    returns (B, N, D)
    """
    B, N, D = z.shape
    assert D % num_heads == 0
    d_h = D // num_heads

    # Pad the sequence to a sublane multiple (8); padded keys are masked in-kernel.
    n_pad = -(-N // 8) * 8
    extra = n_pad - N
    z_p = jnp.pad(z, ((0, 0), (0, extra), (0, 0))) if extra else z

    # Layout plumbing only (no compute hoisted into the wrapper):
    #  * per-head leading-axis weight layout so the kernel never lane-slices,
    #  * bf16 weights/activations to hit MXU peak and halve HBM->VMEM DMA bytes.
    wqkv3 = (wqkv.reshape(D, 3, num_heads, d_h)
             .transpose(1, 2, 0, 3).astype(jnp.bfloat16))      # (3, H, D, d_h)
    bqkv3 = bqkv.reshape(3, num_heads, 1, d_h).astype(jnp.float32)
    wproj3 = wproj.reshape(num_heads, d_h, D).astype(jnp.bfloat16)   # (H, d_h, D)
    bproj2 = bproj.reshape(1, D).astype(jnp.float32)
    z_bf = z_p.astype(jnp.bfloat16)

    kernel = functools.partial(_mha_kernel, num_heads=num_heads, d_h=d_h,
                               n_valid=N)

    out = pl.pallas_call(
        kernel,
        out_shape=jax.ShapeDtypeStruct((B, n_pad, D), z.dtype),
        grid_spec=pltpu.PrefetchScalarGridSpec(
            num_scalar_prefetch=0,
            grid=(B,),
            in_specs=[
                # Per-batch activation tile.
                pl.BlockSpec((1, n_pad, D), lambda b: (b, 0, 0)),
                # Constant index_maps: weights/biases DMA'd once, VMEM-resident.
                pl.BlockSpec((3, num_heads, D, d_h), lambda b: (0, 0, 0, 0)),
                pl.BlockSpec((3, num_heads, 1, d_h), lambda b: (0, 0, 0, 0)),
                pl.BlockSpec((num_heads, d_h, D), lambda b: (0, 0, 0)),
                pl.BlockSpec((1, D), lambda b: (0, 0)),
            ],
            out_specs=pl.BlockSpec((1, n_pad, D), lambda b: (b, 0, 0)),
        ),
        compiler_params=pltpu.CompilerParams(
            dimension_semantics=("parallel",),
            # Explicit VMEM budget so the same config ports to v7x (64 MiB
            # physical / 32 MiB scoped default) without silent re-tiling.
            vmem_limit_bytes=64 * 1024 * 1024,
        ),
    )(z_bf, wqkv3, bqkv3, wproj3, bproj2)

    return out[:, :N, :] if extra else out


def _reference(z, wqkv, bqkv, wproj, bproj, *, num_heads):
    """Pure-JAX mirror of the PyTorch forward (for verification)."""
    B, N, D = z.shape
    d_h = D // num_heads
    qkv = z @ wqkv + bqkv                                  # (B, N, 3D)
    qkv = qkv.reshape(B, N, 3, num_heads, d_h)
    qkv = jnp.transpose(qkv, (2, 0, 3, 1, 4))              # (3, B, H, N, d_h)
    q, k, v = qkv[0], qkv[1], qkv[2]
    s = jnp.einsum("bhqd,bhkd->bhqk", q, k) * (d_h ** -0.5)
    p = jax.nn.softmax(s, axis=-1)
    o = jnp.einsum("bhqk,bhkd->bhqd", p, v)                # (B, H, N, d_h)
    o = jnp.transpose(o, (0, 2, 1, 3)).reshape(B, N, D)    # concat heads
    return o @ wproj + bproj


if __name__ == "__main__":
    # Small shapes consistent with the module: batch=2, seq=8, embed_dim=32,
    # num_heads=4 (d_h=8).
    B, N, D, H = 2, 8, 32, 4

    key = jax.random.PRNGKey(0)
    kz, kwq, kbq, kwp, kbp = jax.random.split(key, 5)
    z = jax.random.normal(kz, (B, N, D), dtype=jnp.float32)
    wqkv = 0.1 * jax.random.normal(kwq, (D, 3 * D), dtype=jnp.float32)
    bqkv = 0.1 * jax.random.normal(kbq, (3 * D,), dtype=jnp.float32)
    wproj = 0.1 * jax.random.normal(kwp, (D, D), dtype=jnp.float32)
    bproj = 0.1 * jax.random.normal(kbp, (D,), dtype=jnp.float32)

    out = multi_head_attention(z, wqkv, bqkv, wproj, bproj, num_heads=H)
    out = jax.block_until_ready(out)

    ref = _reference(z, wqkv, bqkv, wproj, bproj, num_heads=H)
    assert out.shape == (B, N, D), out.shape
    # Tolerance covers bf16 MXU operands (f32 accumulation), the approximate EUP
    # reciprocal in the softmax normalization, and XLA default matmul precision in
    # the reference; structural bugs (wrong head layout / masking) would be O(0.1-1).
    assert jnp.allclose(out, ref, atol=2e-2, rtol=2e-2), "mismatch vs reference"

    print("KERNEL_OK")
</pallas_src>

<mosaic_0001>
module attributes {stable_mosaic.version = 11 : i64} {
  func.func @_mha_kernel(%arg0: i32, %arg1: memref<1x8x32xbf16, #tpu.memory_space<vmem>>, %arg2: memref<3x4x32x8xbf16, #tpu.memory_space<vmem>>, %arg3: memref<3x4x1x8xf32, #tpu.memory_space<vmem>>, %arg4: memref<4x8x32xbf16, #tpu.memory_space<vmem>>, %arg5: memref<1x32xf32, #tpu.memory_space<vmem>>, %arg6: memref<1x8x32xf32, #tpu.memory_space<vmem>>) attributes {dimension_semantics = [#tpu.dimension_semantics<parallel>], iteration_bounds = array<i64: 2>, scalar_prefetch = 0 : i64, scratch_operands = 0 : i64, tpu.core_type = #tpu.core_type<tc>, window_params = [{transform_indices = @transform_0, window_bounds = array<i64: 1, 8, 32>}, {pipeline_mode = #tpu.pipeline_mode<synchronous>, transform_indices = @transform_1, window_bounds = array<i64: 3, 4, 32, 8>}, {pipeline_mode = #tpu.pipeline_mode<synchronous>, transform_indices = @transform_2, window_bounds = array<i64: 3, 4, 1, 8>}, {pipeline_mode = #tpu.pipeline_mode<synchronous>, transform_indices = @transform_3, window_bounds = array<i64: 4, 8, 32>}, {pipeline_mode = #tpu.pipeline_mode<synchronous>, transform_indices = @transform_4, window_bounds = array<i64: 1, 32>}, {transform_indices = @transform_5, window_bounds = array<i64: 1, 8, 32>}]} {
    %c0 = arith.constant 0 : index
    %c0_0 = arith.constant 0 : index
    %c0_1 = arith.constant 0 : index
    %0 = vector.load %arg1[%c0, %c0_0, %c0_1] : memref<1x8x32xbf16, #tpu.memory_space<vmem>>, vector<1x8x32xbf16>
    %1 = vector.shape_cast %0 : vector<1x8x32xbf16> to vector<8x32xbf16>
    %2 = vector.shape_cast %1 : vector<8x32xbf16> to vector<1x8x32xbf16>
    %3 = vector.broadcast %2 : vector<1x8x32xbf16> to vector<4x8x32xbf16>
    %c0_2 = arith.constant 0 : index
    %c0_3 = arith.constant 0 : index
    %c0_4 = arith.constant 0 : index
    %c0_5 = arith.constant 0 : index
    %4 = vector.load %arg2[%c0_2, %c0_3, %c0_4, %c0_5] : memref<3x4x32x8xbf16, #tpu.memory_space<vmem>>, vector<1x4x32x8xbf16>
    %5 = vector.shape_cast %4 : vector<1x4x32x8xbf16> to vector<4x32x8xbf16>
    "tpu.trace_start"() <{level = 10 : i32, message = "hnd,hdf->hnf"}> : () -> ()
    %cst = arith.constant dense<0.000000e+00> : vector<4x8x8xf32>
    %6 = tpu.matmul %3, %5, %cst {dimension_numbers = #tpu.dot_dimension_numbers<[2], [1], [1], [2], [0, 0, 0, 1, 1, 2], [0], [0]>} : vector<4x8x32xbf16>, vector<4x32x8xbf16>, vector<4x8x8xf32> -> vector<4x8x8xf32>
    "tpu.trace_stop"() : () -> ()
    %c0_6 = arith.constant 0 : index
    %c0_7 = arith.constant 0 : index
    %c0_8 = arith.constant 0 : index
    %c0_9 = arith.constant 0 : index
    %7 = vector.load %arg3[%c0_6, %c0_7, %c0_8, %c0_9] : memref<3x4x1x8xf32, #tpu.memory_space<vmem>>, vector<1x4x1x8xf32>
    %8 = vector.shape_cast %7 : vector<1x4x1x8xf32> to vector<4x1x8xf32>
    %9 = vector.broadcast %8 : vector<4x1x8xf32> to vector<4x8x8xf32>
    %10 = arith.addf %6, %9 : vector<4x8x8xf32>
    %cst_10 = arith.constant 0.353553385 : f32
    %11 = vector.broadcast %cst_10 : f32 to vector<4x8x8xf32>
    %12 = arith.mulf %10, %11 : vector<4x8x8xf32>
    %c1 = arith.constant 1 : index
    %c0_11 = arith.constant 0 : index
    %c0_12 = arith.constant 0 : index
    %c0_13 = arith.constant 0 : index
    %13 = vector.load %arg2[%c1, %c0_11, %c0_12, %c0_13] : memref<3x4x32x8xbf16, #tpu.memory_space<vmem>>, vector<1x4x32x8xbf16>
    %14 = vector.shape_cast %13 : vector<1x4x32x8xbf16> to vector<4x32x8xbf16>
    "tpu.trace_start"() <{level = 10 : i32, message = "hnd,hdf->hnf"}> : () -> ()
    %cst_14 = arith.constant dense<0.000000e+00> : vector<4x8x8xf32>
    %15 = tpu.matmul %3, %14, %cst_14 {dimension_numbers = #tpu.dot_dimension_numbers<[2], [1], [1], [2], [0, 0, 0, 1, 1, 2], [0], [0]>} : vector<4x8x32xbf16>, vector<4x32x8xbf16>, vector<4x8x8xf32> -> vector<4x8x8xf32>
    "tpu.trace_stop"() : () -> ()
    %c1_15 = arith.constant 1 : index
    %c0_16 = arith.constant 0 : index
    %c0_17 = arith.constant 0 : index
    %c0_18 = arith.constant 0 : index
    %16 = vector.load %arg3[%c1_15, %c0_16, %c0_17, %c0_18] : memref<3x4x1x8xf32, #tpu.memory_space<vmem>>, vector<1x4x1x8xf32>
    %17 = vector.shape_cast %16 : vector<1x4x1x8xf32> to vector<4x1x8xf32>
    %18 = vector.broadcast %17 : vector<4x1x8xf32> to vector<4x8x8xf32>
    %19 = arith.addf %15, %18 : vector<4x8x8xf32>
    %c2 = arith.constant 2 : index
    %c0_19 = arith.constant 0 : index
    %c0_20 = arith.constant 0 : index
    %c0_21 = arith.constant 0 : index
    %20 = vector.load %arg2[%c2, %c0_19, %c0_20, %c0_21] : memref<3x4x32x8xbf16, #tpu.memory_space<vmem>>, vector<1x4x32x8xbf16>
    %21 = vector.shape_cast %20 : vector<1x4x32x8xbf16> to vector<4x32x8xbf16>
    "tpu.trace_start"() <{level = 10 : i32, message = "hnd,hdf->hnf"}> : () -> ()
    %cst_22 = arith.constant dense<0.000000e+00> : vector<4x8x8xf32>
    %22 = tpu.matmul %3, %21, %cst_22 {dimension_numbers = #tpu.dot_dimension_numbers<[2], [1], [1], [2], [0, 0, 0, 1, 1, 2], [0], [0]>} : vector<4x8x32xbf16>, vector<4x32x8xbf16>, vector<4x8x8xf32> -> vector<4x8x8xf32>
    "tpu.trace_stop"() : () -> ()
    %c2_23 = arith.constant 2 : index
    %c0_24 = arith.constant 0 : index
    %c0_25 = arith.constant 0 : index
    %c0_26 = arith.constant 0 : index
    %23 = vector.load %arg3[%c2_23, %c0_24, %c0_25, %c0_26] : memref<3x4x1x8xf32, #tpu.memory_space<vmem>>, vector<1x4x1x8xf32>
    %24 = vector.shape_cast %23 : vector<1x4x1x8xf32> to vector<4x1x8xf32>
    %25 = vector.broadcast %24 : vector<4x1x8xf32> to vector<4x8x8xf32>
    %26 = arith.addf %22, %25 : vector<4x8x8xf32>
    %27 = arith.truncf %12 : vector<4x8x8xf32> to vector<4x8x8xbf16>
    %28 = arith.truncf %19 : vector<4x8x8xf32> to vector<4x8x8xbf16>
    "tpu.trace_start"() <{level = 10 : i32, message = "hqf,hkf->hqk"}> : () -> ()
    %cst_27 = arith.constant dense<0.000000e+00> : vector<4x8x8xf32>
    %29 = tpu.matmul %27, %28, %cst_27 {dimension_numbers = #tpu.dot_dimension_numbers<[2], [2], [1], [1], [0, 0, 0, 1, 1, 1], [0], [0]>} : vector<4x8x8xbf16>, vector<4x8x8xbf16>, vector<4x8x8xf32> -> vector<4x8x8xf32>
    "tpu.trace_stop"() : () -> ()
    %cst_28 = arith.constant dense<0xFF800000> : vector<4x8xf32>
    %30 = vector.multi_reduction <maximumf>, %29, %cst_28 [2] : vector<4x8x8xf32> to vector<4x8xf32>
    %31 = vector.shape_cast %30 : vector<4x8xf32> to vector<4x8x1xf32>
    %32 = vector.broadcast %31 : vector<4x8x1xf32> to vector<4x8x8xf32>
    %33 = arith.subf %29, %32 : vector<4x8x8xf32>
    %34 = math.exp %33 : vector<4x8x8xf32>
    %cst_29 = arith.constant dense<0.000000e+00> : vector<4x8xf32>
    %35 = vector.multi_reduction <add>, %34, %cst_29 [2] : vector<4x8x8xf32> to vector<4x8xf32>
    %36 = vector.shape_cast %35 : vector<4x8xf32> to vector<4x8x1xf32>
    %37 = tpu.reciprocal %36 {approx = true} : vector<4x8x1xf32> -> vector<4x8x1xf32>
    %38 = vector.broadcast %37 : vector<4x8x1xf32> to vector<4x8x8xf32>
    %39 = arith.mulf %34, %38 : vector<4x8x8xf32>
    %40 = arith.truncf %39 : vector<4x8x8xf32> to vector<4x8x8xbf16>
    %41 = arith.truncf %26 : vector<4x8x8xf32> to vector<4x8x8xbf16>
    "tpu.trace_start"() <{level = 10 : i32, message = "hqk,hkf->hqf"}> : () -> ()
    %cst_30 = arith.constant dense<0.000000e+00> : vector<4x8x8xf32>
    %42 = tpu.matmul %40, %41, %cst_30 {dimension_numbers = #tpu.dot_dimension_numbers<[2], [1], [1], [2], [0, 0, 0, 1, 1, 2], [0], [0]>} : vector<4x8x8xbf16>, vector<4x8x8xbf16>, vector<4x8x8xf32> -> vector<4x8x8xf32>
    "tpu.trace_stop"() : () -> ()
    %43 = arith.truncf %42 : vector<4x8x8xf32> to vector<4x8x8xbf16>
    %c0_31 = arith.constant 0 : index
    %c0_32 = arith.constant 0 : index
    %c0_33 = arith.constant 0 : index
    %44 = vector.load %arg4[%c0_31, %c0_32, %c0_33] : memref<4x8x32xbf16, #tpu.memory_space<vmem>>, vector<4x8x32xbf16>
    "tpu.trace_start"() <{level = 10 : i32, message = "hnf,hfe->hne"}> : () -> ()
    %cst_34 = arith.constant dense<0.000000e+00> : vector<4x8x32xf32>
    %45 = tpu.matmul %43, %44, %cst_34 {dimension_numbers = #tpu.dot_dimension_numbers<[2], [1], [1], [2], [0, 0, 0, 1, 1, 2], [0], [0]>} : vector<4x8x8xbf16>, vector<4x8x32xbf16>, vector<4x8x32xf32> -> vector<4x8x32xf32>
    "tpu.trace_stop"() : () -> ()
    %cst_35 = arith.constant dense<0.000000e+00> : vector<8x32xf32>
    %46 = vector.multi_reduction <add>, %45, %cst_35 [0] : vector<4x8x32xf32> to vector<8x32xf32>
    %c0_36 = arith.constant 0 : index
    %c0_37 = arith.constant 0 : index
    %47 = vector.load %arg5[%c0_36, %c0_37] : memref<1x32xf32, #tpu.memory_space<vmem>>, vector<1x32xf32>
    %48 = vector.broadcast %47 : vector<1x32xf32> to vector<8x32xf32>
    %49 = arith.addf %46, %48 : vector<8x32xf32>
    %c0_38 = arith.constant 0 : index
    %c0_39 = arith.constant 0 : index
    %c0_40 = arith.constant 0 : index
    %50 = vector.load %arg6[%c0_38, %c0_39, %c0_40] : memref<1x8x32xf32, #tpu.memory_space<vmem>>, vector<1x8x32xf32>
    %51 = vector.shape_cast %50 : vector<1x8x32xf32> to vector<8x32xf32>
    %52 = vector.shape_cast %49 : vector<8x32xf32> to vector<1x8x32xf32>
    tpu.vector_store %arg6[%c0_38, %c0_39, %c0_40], %52 {strides = array<i32>} : memref<1x8x32xf32, #tpu.memory_space<vmem>>, vector<1x8x32xf32>,
    return
  }
  func.func @transform_0(%arg0: i32) -> (i32, i32, i32) {
    %c0_i32 = arith.constant 0 : i32
    %c0_i32_0 = arith.constant 0 : i32
    %c0_i32_1 = arith.constant 0 : i32
    return %arg0, %c0_i32, %c0_i32_0 : i32, i32, i32
  }
  func.func @transform_1(%arg0: i32) -> (i32, i32, i32, i32) {
    %c0_i32 = arith.constant 0 : i32
    %c0_i32_0 = arith.constant 0 : i32
    %c0_i32_1 = arith.constant 0 : i32
    %c0_i32_2 = arith.constant 0 : i32
    %c0_i32_3 = arith.constant 0 : i32
    return %c0_i32, %c0_i32_0, %c0_i32_1, %c0_i32_2 : i32, i32, i32, i32
  }
  func.func @transform_2(%arg0: i32) -> (i32, i32, i32, i32) {
    %c0_i32 = arith.constant 0 : i32
    %c0_i32_0 = arith.constant 0 : i32
    %c0_i32_1 = arith.constant 0 : i32
    %c0_i32_2 = arith.constant 0 : i32
    %c0_i32_3 = arith.constant 0 : i32
    return %c0_i32, %c0_i32_0, %c0_i32_1, %c0_i32_2 : i32, i32, i32, i32
  }
  func.func @transform_3(%arg0: i32) -> (i32, i32, i32) {
    %c0_i32 = arith.constant 0 : i32
    %c0_i32_0 = arith.constant 0 : i32
    %c0_i32_1 = arith.constant 0 : i32
    %c0_i32_2 = arith.constant 0 : i32
    return %c0_i32, %c0_i32_0, %c0_i32_1 : i32, i32, i32
  }
  func.func @transform_4(%arg0: i32) -> (i32, i32) {
    %c0_i32 = arith.constant 0 : i32
    %c0_i32_0 = arith.constant 0 : i32
    %c0_i32_1 = arith.constant 0 : i32
    return %c0_i32, %c0_i32_0 : i32, i32
  }
  func.func @transform_5(%arg0: i32) -> (i32, i32, i32) {
    %c0_i32 = arith.constant 0 : i32
    %c0_i32_0 = arith.constant 0 : i32
    %c0_i32_1 = arith.constant 0 : i32
    return %arg0, %c0_i32, %c0_i32_0 : i32, i32, i32
  }
}

</mosaic_0001>

<bundles_post_ra>
// kernel: tpu_custom_call.1
= control target key start
LH: loop header
LB: loop body
LE: loop exit
PB: predicated region body
PF: predicated region fallthrough
CT: control target
= control target key end

     0   :  { %10 = vsyncpa [#allocation3], 0  ;;  %s1629_s0 = inlined_call_operand.vmem [shape: bf16[2,8,32], index: 0, kind: input, shape index: {}]   ;;  %s1630_s1 = inlined_call_operand.vmem [shape: bf16[3,4,32,8], index: 1, kind: input, shape index: {}]   ;;  %s1631_s2 = inlined_call_operand.vmem [shape: f32[3,4,1,8], index: 2, kind: input, shape index: {}]   ;;  %s1632_s3 = inlined_call_operand.vmem [shape: bf16[4,8,32], index: 3, kind: input, shape index: {}]   ;;  %s1633_s4 = inlined_call_operand.vmem [shape: f32[1,32], index: 4, kind: input, shape index: {}]   ;;  %s1634_s5 = inlined_call_operand.hbm [shape: f32[2,8,32], index: 5, kind: output, shape index: {}]  }
   0x1   :  { %12 = vsyncpa [#allocation3 + $0x1], 0  ;;  %s1372_s18 = smov 0   ;;  %s1374_s19 = smov 0  }
   0x2   :  { %s1376_s20 = smov 0   ;;  %s1378_s21 = smov 0  }
   0x3 LB: > { %s1393_s22 = sadd.s32 4294967295, %s1340_s21   ;;  %s1016_s23 = sadd.s32 4294967294, %s1340_s21   ;;  %s1340_s21 = sphi %s1378_s21, %s1640_s21   ;;  %s1336_s20 = sphi %s1376_s20, %s1639_s20   ;;  %s1332_s19 = sphi %s1374_s19, %s1638_s19   ;;  %s1328_s18 = sphi %s1372_s18, %s1637_s18  }
   0x4   : > { %s1397_s24 = sadd.s32 1, %s1340_s21   ;;  %s135_s25 = sadd.s32 1, %s1336_s20 }
   0x5   : > { %s132_s26 = ssub.s32 %s1340_s21, %s1397_s24  ;;  %p145_p0 = scmp.ne.s32.totalorder %s1336_s20, %s1332_s19 }
   0x6   : > { %p133_p1 = scmp.eq.s32.totalorder %s132_s26, 0  ;;  %p146_p2 = scmp.eq.s32.totalorder %s1393_s22, 1 }
   0x7   : > { %p151_p3 = scmp.ne.s32.totalorder %s1332_s19, %s1328_s18  ;;  %p152_p4 = scmp.eq.s32.totalorder %s1016_s23, 1 }
   0x8   : > { %s1408_s27 = scalar_select %p133_p1, %s1336_s20, %s135_s25  }
   0x9   : > { %p1410_p5 = por %p146_p2, %p145_p0  ;;  %p1414_p6 = por %p152_p4, %p151_p3 }
   0xa   : > { %p1019_p7 = scmp.ge.s32.totalorder %s1340_s21, 1  ;;  %p189_p8 = scmp.lt.s32.totalorder %s1340_s21, 3 }
   0xc   : > { %p190_p9 = pnand %p1019_p7, %p189_p8 }
   0xd   : > { %p216_p10 = scmp.lt.s32.totalorder (!%p190_p9), %s1393_s22, 1  ;;  %s213_s10 = sand.u32 (!%p190_p9), 1, %s1332_s19  }
   0xe   : > { %193 = sbr.rel (%p190_p9) target bundleno = 859 (0x35b), region = 40  ;;  %s1020_s11 = sshll.u32 (!%p190_p9), %s213_s10, 3 }
   0xf   : > { %s1183_s12 = sshll.u32 (!%p190_p9), %s1393_s22, 3  ;;  %s942_s26 = scalar_lea.sflag (!%p190_p9), [#allocation3], %s213_s10 }
  0x10   : > { %s952_s15 = scalar_lea.hbm (!%p190_p9), %s1634_s5, %s1183_s12  ;;  %s1298_s9 = scalar_lea.hbm (!%p190_p9), %s1634_s5, 16 }
  0x11   : > { %s956_s25 = sshll.u32 (!%p190_p9), %s952_s15, 4  ;;  %s957_s25 = int_to_ptr.hbm [resolvable:$true] %s956_s25 }
  0x12   : > { %s1292_s30 = sshra.s32 (!%p190_p9), %s957_s25, 4  ;;  %s1293_s30 = int_to_ptr.hbm [resolvable:$true] %s1292_s30 }
  0x13   : > { %v1187_v0 = vld [vmem:[%s1630_s1 + $0x8] sm:$0xff]  ;;  %v1189_v1 = vld [vmem:[%s1630_s1 + $0x18] sm:$0xff]  ;;  %v1186_v4 = vld [vmem:[%s1630_s1] sm:$0xff]  ;;  %s217_s17 = scalar_select %p216_p10, %s1393_s22, 1  ;;  %vm266_vm0 = vcmask 261120   ;;  %vm638_vm1 = vcmask 64512  }
  0x14   : > { %v1191_v2 = vld [vmem:[%s1630_s1 + $0x28] sm:$0xff]  ;;  %v1193_v3 = vld [vmem:[%s1630_s1 + $0x38] sm:$0xff]  ;;  %276 = vmatpush.bf16.msra.mxu0 %v1187_v0  ;;  %301 = vmatpush.bf16.msra.mxu1 %v1189_v1  ;;  %v1188_v5 = vld [vmem:[%s1630_s1 + $0x10] sm:$0xff]  ;;  %vm770_vm2 = vcmask 1043456   ;;  %s215_s22 = scalar_lea.vmem [#allocation2], %s1020_s11  ;;  %p1299_p0 = scmp.lt.s32.totalorder %s1293_s30, %s1634_s5 }
  0x15   : > { %326 = vmatpush.bf16.msra.mxu2 %v1191_v2  ;;  %351 = vmatpush.bf16.msra.mxu3 %v1193_v3  ;;  %v1190_v6 = vld [vmem:[%s1630_s1 + $0x20] sm:$0xff]  ;;  %v1192_v7 = vld [vmem:[%s1630_s1 + $0x30] sm:$0xff]  ;;  %s1021_s6 = sshll.u32 %s217_s17, 2  ;;  %v1195_v8 = vld [vmem:[%s1630_s1 + $0x48] sm:$0xff]  ;;  %s954_s17 = sshll.u32 %s215_s22, 4  ;;  %s955_s17 = int_to_ptr.vmem [resolvable:$true] %s954_s17 }
  0x16   : > { %v1197_v9 = vld [vmem:[%s1630_s1 + $0x58] sm:$0xff]  ;;  %s219_s13 = scalar_lea.vmem %s1629_s0, %s1021_s6  ;;  %v1199_v10 = vld [vmem:[%s1630_s1 + $0x68] sm:$0xff]  ;;  %v1194_v13 = vld [vmem:[%s1630_s1 + $0x40] sm:$0xff]  ;;  %s1294_s6 = scalar_lea.hbm %s1293_s30, 8 }
  0x17   : > { %v1201_v11 = vld [vmem:[%s1630_s1 + $0x78] sm:$0xff]  ;;  %v221_v12 = vld [vmem:[%s219_s13] sm:$0xf]  ;;  %v1196_v14 = vld [vmem:[%s1630_s1 + $0x50] sm:$0xff]  ;;  %p1295_p11 = scmp.ne.s32.totalorder %s1293_s30, %s1294_s6  ;;  %p1300_p1 = scmp.lt.s32.totalorder %s1298_s9, %s1294_s6 }
  0x18   : > { %277 = vmatpush.bf16.msra.mxu0 %v1186_v4  ;;  %302 = vmatpush.bf16.msra.mxu1 %v1188_v5  ;;  %v1198_v15 = vld [vmem:[%s1630_s1 + $0x60] sm:$0xff]  ;;  %v1200_v16 = vld [vmem:[%s1630_s1 + $0x70] sm:$0xff]  ;;  %v1207_v17 = vld [vmem:[%s1630_s1 + $0xa8] sm:$0xff] }
  0x19   : > { %327 = vmatpush.bf16.msra.mxu2 %v1190_v6  ;;  %352 = vmatpush.bf16.msra.mxu3 %v1192_v7  ;;  %v1203_v18 = vld [vmem:[%s1630_s1 + $0x88] sm:$0xff]  ;;  %v1205_v19 = vld [vmem:[%s1630_s1 + $0x98] sm:$0xff]  ;;  %v1206_v20 = vld [vmem:[%s1630_s1 + $0xa0] sm:$0xff]  ;;  %p1296_p12 = pnand %p1295_p11, %p1410_p5  ;;  %p1301_p2 = por %p1300_p1, %p1299_p0 }
  0x1a   : > { %v1202_v21 = vld [vmem:[%s1630_s1 + $0x80] sm:$0xff]  ;;  %v1204_v22 = vld [vmem:[%s1630_s1 + $0x90] sm:$0xff]  ;;  %v1209_v23 = vld [vmem:[%s1630_s1 + $0xb8] sm:$0xff] }
  0x1b   : > { %1030 = vmatmul.msk.bf16.vlgmr.msra.gmra.mxu0 %vm266_vm0, %v221_v12  ;;  %1039 = vmatmul.msk.bf16.vlgmr.msra.gmra.mxu1 %vm266_vm0, %v221_v12  ;;  %v1208_v24 = vld [vmem:[%s1630_s1 + $0xb0] sm:$0xff]  ;;  %v1249_v31 = vld [vmem:[%s1631_s2] ss:$0 sm:$0xff]  ;;  %v1250_v32 = vld [vmem:[%s1631_s2 + $0x1] ss:$0 sm:$0xff]  ;;  %p1297_p13 = pneg %p1296_p12 }
  0x1c   : > { %414 = vmatpush.bf16.msrb.mxu0 %v1195_v8  ;;  %439 = vmatpush.bf16.msrb.mxu1 %v1197_v9  ;;  %v1253_v33 = vld [vmem:[%s1631_s2 + $0x4] ss:$0 sm:$0xff]  ;;  %v1254_v34 = vld [vmem:[%s1631_s2 + $0x5] ss:$0 sm:$0xff]  ;;  %v1255_v45 = vld [vmem:[%s1631_s2 + $0x6] ss:$0 sm:$0xff] }
  0x1d   : > { %1048 = vmatmul.msk.bf16.vlgmr.msra.gmra.mxu2 %vm266_vm0, %v221_v12  ;;  %1057 = vmatmul.msk.bf16.vlgmr.msra.gmra.mxu3 %vm266_vm0, %v221_v12  ;;  %v1256_v46 = vld [vmem:[%s1631_s2 + $0x7] ss:$0 sm:$0xff]  ;;  %v1251_v51 = vld [vmem:[%s1631_s2 + $0x2] ss:$0 sm:$0xff]  ;;  %v1252_v52 = vld [vmem:[%s1631_s2 + $0x3] ss:$0 sm:$0xff]  ;;  %p1302_p3 = pnand %p1301_p2, %p1297_p13 }
  0x1e   : > { %464 = vmatpush.bf16.msrb.mxu2 %v1199_v10  ;;  %489 = vmatpush.bf16.msrb.mxu3 %v1201_v11  ;;  %v1257_v9 = vld [vmem:[%s1631_s2 + $0x8] ss:$0 sm:$0xff]  ;;  %v1258_v10 = vld [vmem:[%s1631_s2 + $0x9] ss:$0 sm:$0xff] }
  0x20   : > { %415 = vmatpush.bf16.msrb.mxu0 %v1194_v13  ;;  %440 = vmatpush.bf16.msrb.mxu1 %v1196_v14  ;;  %v1259_v14 = vld [vmem:[%s1631_s2 + $0xa] ss:$0 sm:$0xff] }
  0x22   : > { %465 = vmatpush.bf16.msrb.mxu2 %v1198_v15  ;;  %490 = vmatpush.bf16.msrb.mxu3 %v1200_v16 }
  0x24   : > { %548 = vmatpush.bf16.msra.mxu0 %v1203_v18  ;;  %573 = vmatpush.bf16.msra.mxu1 %v1205_v19 }
  0x26   : > { %598 = vmatpush.bf16.msra.mxu2 %v1207_v17  ;;  %623 = vmatpush.bf16.msra.mxu3 %v1209_v23 }
  0x28   : > { %549 = vmatpush.bf16.msra.mxu0 %v1202_v21  ;;  %574 = vmatpush.bf16.msra.mxu1 %v1204_v22 }
  0x2a   : > { %599 = vmatpush.bf16.msra.mxu2 %v1206_v20  ;;  %624 = vmatpush.bf16.msra.mxu3 %v1208_v24 }
  0x2b   : > { %1086 = vmatmul.msk.bf16.vlgmr.msrb.gmra.mxu0 %vm266_vm0, %v221_v12  ;;  %1095 = vmatmul.msk.bf16.vlgmr.msrb.gmra.mxu1 %vm266_vm0, %v221_v12 }
  0x2d   : > { %1104 = vmatmul.msk.bf16.vlgmr.msrb.gmra.mxu2 %vm266_vm0, %v221_v12  ;;  %1113 = vmatmul.msk.bf16.vlgmr.msrb.gmra.mxu3 %vm266_vm0, %v221_v12 }
  0x3b   : > { %1142 = vmatmul.msk.bf16.vlgmr.msra.gmra.mxu0 %vm266_vm0, %v221_v12  ;;  %1151 = vmatmul.msk.bf16.vlgmr.msra.gmra.mxu1 %vm266_vm0, %v221_v12 }
  0x3d   : > { %1160 = vmatmul.msk.bf16.vlgmr.msra.gmra.mxu2 %vm266_vm0, %v221_v12  ;;  %1169 = vmatmul.msk.bf16.vlgmr.msra.gmra.mxu3 %vm266_vm0, %v221_v12 }
  0x98   : > { %v279_v25 = vpop.f32.mrf.mxu0  ;;  %v304_v26 = vpop.f32.mrf.mxu1 }
  0x99   : > { %v280_v39 = vadd.f32 %v1249_v31, %v279_v25  ;;  %v305_v40 = vadd.f32 %v1250_v32, %v304_v26  ;;  %v1260_v26 = vld [vmem:[%s1631_s2 + $0xb] ss:$0 sm:$0xff] }
  0x9b   : > { %v358_v47 = vmul.f32 0.35355338, %v280_v39  ;;  %v359_v48 = vmul.f32 0.35355338, %v305_v40 }
  0x9d   : > { %v630_v59 = vpack.c.bf16 %v358_v47, %v358_v47  ;;  %v631_v60 = vpack.c.bf16 %v359_v48, %v359_v48 }
  0xa0   : > { %v329_v27 = vpop.f32.mrf.mxu2  ;;  %v354_v28 = vpop.f32.mrf.mxu3 }
  0xa1   : > { %v281_v29 = vpop.f32.mrf.mxu0  ;;  %v306_v30 = vpop.f32.mrf.mxu1  ;;  %v330_v61 = vadd.f32 %v1251_v51, %v329_v27  ;;  %v355_v62 = vadd.f32 %v1252_v52, %v354_v28 }
  0xa3   : > { %v360_v3 = vmul.f32 0.35355338, %v330_v61  ;;  %v361_v4 = vmul.f32 0.35355338, %v355_v62 }
  0xa5   : > { %v632_v7 = vpack.c.bf16 %v360_v3, %v360_v3  ;;  %v633_v8 = vpack.c.bf16 %v361_v4, %v361_v4 }
  0xa8   : > { %v331_v35 = vpop.f32.mrf.mxu2  ;;  %v356_v36 = vpop.f32.mrf.mxu3 }
  0xa9   : > { %v417_v37 = vpop.f32.mrf.mxu0  ;;  %v442_v38 = vpop.f32.mrf.mxu1 }
  0xaa   : > { %v418_v41 = vadd.f32 %v1253_v33, %v417_v37  ;;  %v443_v42 = vadd.f32 %v1254_v34, %v442_v38 }
  0xac   : > { %v634_v43 = vpack.c.bf16 %v418_v41, %v418_v41  ;;  %v635_v44 = vpack.c.bf16 %v443_v42, %v443_v42 }
  0xae   : > { %v643_v49 = vsel %vm638_vm1, %v634_v43, 0  ;;  %v662_v50 = vsel %vm638_vm1, %v635_v44, 0 }
  0xaf   : > { %652 = vmatpush.bf16.xpose.msrb.mxu0 %v643_v49  ;;  %671 = vmatpush.bf16.xpose.msrb.mxu1 %v662_v50 }
  0xb0   : > { %v467_v53 = vpop.f32.mrf.mxu2  ;;  %v492_v54 = vpop.f32.mrf.mxu3 }
  0xb1   : > { %v468_v55 = vadd.f32 %v1255_v45, %v467_v53  ;;  %v493_v56 = vadd.f32 %v1256_v46, %v492_v54  ;;  %v419_v57 = vpop.f32.mrf.mxu0  ;;  %v444_v58 = vpop.f32.mrf.mxu1 }
  0xb3   : > { %v636_v63 = vpack.c.bf16 %v468_v55, %v468_v55  ;;  %v637_v0 = vpack.c.bf16 %v493_v56, %v493_v56 }
  0xb5   : > { %v681_v1 = vsel %vm638_vm1, %v636_v63, 0  ;;  %v700_v2 = vsel %vm638_vm1, %v637_v0, 0 }
  0xb6   : > { %690 = vmatpush.bf16.xpose.msrb.mxu2 %v681_v1  ;;  %709 = vmatpush.bf16.xpose.msrb.mxu3 %v700_v2 }
  0xb7   : > { %1170 = vmatmul.msk.bf16.vlgmr.msrb.gmra.mxu0 %vm638_vm1, %v630_v59  ;;  %1171 = vmatmul.msk.bf16.vlgmr.msrb.gmra.mxu1 %vm638_vm1, %v631_v60 }
  0xb8   : > { %v469_v5 = vpop.f32.mrf.mxu2  ;;  %v494_v6 = vpop.f32.mrf.mxu3 }
  0xb9   : > { %v551_v11 = vpop.f32.mrf.mxu0  ;;  %v576_v13 = vpop.f32.mrf.mxu1 }
  0xba   : > { %v552_v12 = vadd.f32 %v1257_v9, %v551_v11  ;;  %v577_v15 = vadd.f32 %v1258_v10, %v576_v13 }
  0xbc   : > { %v763_v16 = vpack.c.bf16 %v552_v12, %v552_v12  ;;  %v764_v17 = vpack.c.bf16 %v577_v15, %v577_v15 }
  0xbd   : > { %1172 = vmatmul.msk.bf16.vlgmr.msrb.gmra.mxu2 %vm638_vm1, %v632_v7  ;;  %1173 = vmatmul.msk.bf16.vlgmr.msrb.gmra.mxu3 %vm638_vm1, %v633_v8 }
  0xbe   : > { %v772_v19 = vsel %vm770_vm2, %v763_v16, 0  ;;  %v791_v21 = vsel %vm770_vm2, %v764_v17, 0  ;;  %v848_v17 = vld [vmem:[%s1632_s3] sm:$0xf] }
  0xbf   : > { %781 = vmatpush.bf16.msra.mxu0 %v772_v19  ;;  %800 = vmatpush.bf16.msra.mxu1 %v791_v21  ;;  %v849_v19 = vld [vmem:[%s1632_s3 + $0x4] sm:$0xf]  ;;  %v850_v21 = vld [vmem:[%s1632_s3 + $0x8] sm:$0xf] }
  0xc0   : > { %v601_v18 = vpop.f32.mrf.mxu2  ;;  %v626_v27 = vpop.f32.mrf.mxu3 }
  0xc1   : > { %v602_v20 = vadd.f32 %v1259_v14, %v601_v18  ;;  %v553_v23 = vpop.f32.mrf.mxu0  ;;  %v578_v24 = vpop.f32.mrf.mxu1  ;;  %v627_v29 = vadd.f32 %v1260_v26, %v626_v27  ;;  %v856_v18 = vsel %vm770_vm2, %v848_v17, 0 }
  0xc2   : > { %v851_v23 = vld [vmem:[%s1632_s3 + $0xc] sm:$0xf] }
  0xc3   : > { %v765_v22 = vpack.c.bf16 %v602_v20, %v602_v20  ;;  %v766_v30 = vpack.c.bf16 %v627_v29, %v627_v29  ;;  %865 = vmatpush.bf16.msrb.mxu0 %v856_v18  ;;  %v875_v20 = vsel %vm770_vm2, %v849_v19, 0  ;;  %v913_v24 = vsel %vm770_vm2, %v851_v23, 0 }
  0xc4   : > { %884 = vmatpush.bf16.msrb.mxu1 %v875_v20 }
  0xc5   : > { %v810_v25 = vsel %vm770_vm2, %v765_v22, 0  ;;  %v829_v31 = vsel %vm770_vm2, %v766_v30, 0  ;;  %v894_v22 = vsel %vm770_vm2, %v850_v21, 0 }
  0xc6   : > { %819 = vmatpush.bf16.msra.mxu2 %v810_v25  ;;  %838 = vmatpush.bf16.msra.mxu3 %v829_v31 }
  0xc8   : > { %v603_v28 = vpop.f32.mrf.mxu2  ;;  %v628_v32 = vpop.f32.mrf.mxu3 }
  0xca   : > { %903 = vmatpush.bf16.msrb.mxu2 %v894_v22  ;;  %922 = vmatpush.bf16.msrb.mxu3 %v913_v24 }
 0x134   : > { %v654_v33 = vpop.f32.mrf.mxu0  ;;  %v673_v34 = vpop.f32.mrf.mxu1 }
 0x135   : > { %v715_v35 = vsel %vm638_vm1, %v654_v33, -inf  ;;  %v718_v36 = vsel %vm638_vm1, %v673_v34, -inf }
 0x136   : > { %716 = vmax.xlane.f32.xlu1 %v715_v35 }
 0x13c   : > { %v656_v37 = vpop.f32.mrf.mxu0  ;;  %v675_v38 = vpop.f32.mrf.mxu1 }
 0x13e   : > { %719 = vmax.xlane.f32.xlu1 %v718_v36 }
 0x140   : > { %v692_v39 = vpop.f32.mrf.mxu2  ;;  %v711_v40 = vpop.f32.mrf.mxu3 }
 0x141   : > { %v721_v41 = vsel %vm638_vm1, %v692_v39, -inf  ;;  %v724_v44 = vsel %vm638_vm1, %v711_v40, -inf }
 0x142   : > { %722 = vmax.xlane.f32.xlu0 %v721_v41 }
 0x148   : > { %v694_v42 = vpop.f32.mrf.mxu2  ;;  %v713_v43 = vpop.f32.mrf.mxu3 }
 0x14a   : > { %725 = vmax.xlane.f32.xlu0 %v724_v44 }
 0x1a9   : > { %v717_v45 = vpop.xlane.xlu1 %716 }
 0x1aa   : > { %v727_v46 = vsub.f32 %v654_v33, %v717_v45 }
 0x1ac   : > { %v731_v47 = vmul.f32 1.442695, %v727_v46 }
 0x1ae   : > { %1262 = vpow2.f32 %v731_v47 }
 0x1b1   : > { %v720_v48 = vpop.xlane.xlu1 %719 }
 0x1b2   : > { %v728_v49 = vsub.f32 %v673_v34, %v720_v48 }
 0x1b4   : > { %v1263_v50 = vpop.eup %1262  ;;  %v733_v51 = vmul.f32 1.442695, %v728_v49  ;;  %v1261_v49 = vld [vmem:[%s1633_s4] ss:$0 sm:$0xff] }
 0x1b5   : > { %v723_v52 = vpop.xlane.xlu0 %722  ;;  %v739_v53 = vsel %vm638_vm1, %v1263_v50, 0.0 }
 0x1b6   : > { %1264 = vpow2.f32 %v733_v51  ;;  %v729_v54 = vsub.f32 %v692_v39, %v723_v52  ;;  %740 = vadd.xlane.f32.xlu0 %v739_v53 }
 0x1b8   : > { %v735_v55 = vmul.f32 1.442695, %v729_v54 }
 0x1ba   : > { %1266 = vpow2.f32 %v735_v55 }
 0x1bc   : > { %v1265_v56 = vpop.eup %1264 }
 0x1bd   : > { %v726_v57 = vpop.xlane.xlu0 %725  ;;  %v742_v58 = vsel %vm638_vm1, %v1265_v56, 0.0 }
 0x1be   : > { %v730_v59 = vsub.f32 %v711_v40, %v726_v57  ;;  %743 = vadd.xlane.f32.xlu1 %v742_v58 }
 0x1c0   : > { %v1267_v60 = vpop.eup %1266  ;;  %v737_v61 = vmul.f32 1.442695, %v730_v59 }
 0x1c1   : > { %v745_v62 = vsel %vm638_vm1, %v1267_v60, 0.0 }
 0x1c2   : > { %1268 = vpow2.f32 %v737_v61  ;;  %746 = vadd.xlane.f32.xlu2 %v745_v62 }
 0x1c8   : > { %v1269_v63 = vpop.eup %1268 }
 0x1c9   : > { %v748_v0 = vsel %vm638_vm1, %v1269_v63, 0.0 }
 0x1ca   : > { %749 = vadd.xlane.f32.xlu2 %v748_v0 }
 0x229   : > { %v741_v1 = vpop.xlane.xlu0 %740 }
 0x22a   : > { %1270 = vrcp.f32 %v741_v1 }
 0x230   : > { %v1271_v2 = vpop.eup %1270 }
 0x231   : > { %v755_v3 = vmul.f32 %v1271_v2, %v1263_v50  ;;  %v744_v4 = vpop.xlane.xlu1 %743 }
 0x232   : > { %1272 = vrcp.f32 %v744_v4 }
 0x233   : > { %v759_v5 = vpack.c.bf16 %v755_v3, %v755_v3 }
 0x235   : > { %v747_v6 = vpop.xlane.xlu2 %746  ;;  %1174 = vmatmul.msk.bf16.vlgmr.msra.gmra.mxu0 %vm638_vm1, %v759_v5 }
 0x236   : > { %1274 = vrcp.f32 %v747_v6 }
 0x238   : > { %v1273_v7 = vpop.eup %1272 }
 0x239   : > { %v756_v8 = vmul.f32 %v1273_v7, %v1265_v56 }
 0x23b   : > { %v760_v9 = vpack.c.bf16 %v756_v8, %v756_v8 }
 0x23c   : > { %v1275_v10 = vpop.eup %1274 }
 0x23d   : > { %v757_v11 = vmul.f32 %v1275_v10, %v1267_v60  ;;  %v750_v12 = vpop.xlane.xlu2 %749  ;;  %1175 = vmatmul.msk.bf16.vlgmr.msra.gmra.mxu1 %vm638_vm1, %v760_v9 }
 0x23e   : > { %1276 = vrcp.f32 %v750_v12 }
 0x23f   : > { %v761_v13 = vpack.c.bf16 %v757_v11, %v757_v11 }
 0x241   : > { %1176 = vmatmul.msk.bf16.vlgmr.msra.gmra.mxu2 %vm638_vm1, %v761_v13 }
 0x244   : > { %v1277_v14 = vpop.eup %1276 }
 0x245   : > { %v758_v15 = vmul.f32 %v1277_v14, %v1269_v63 }
 0x247   : > { %v762_v16 = vpack.c.bf16 %v758_v15, %v758_v15 }
 0x249   : > { %1177 = vmatmul.msk.bf16.vlgmr.msra.gmra.mxu3 %vm638_vm1, %v762_v16 }
 0x2b2   : > { %v783_v25 = vpop.f32.mrf.mxu0 }
 0x2b3   : > { %v844_v26 = vpack.c.bf16 %v783_v25, %v783_v25 }
 0x2b5   : > { %1178 = vmatmul.msk.bf16.vlgmr.msrb.gmra.mxu0 %vm638_vm1, %v844_v26 }
 0x2ba   : > { %v785_v27 = vpop.f32.mrf.mxu0  ;;  %v802_v28 = vpop.f32.mrf.mxu1 }
 0x2bb   : > { %v845_v29 = vpack.c.bf16 %v802_v28, %v802_v28 }
 0x2bd   : > { %1179 = vmatmul.msk.bf16.vlgmr.msrb.gmra.mxu1 %vm638_vm1, %v845_v29 }
 0x2c2   : > { %v804_v30 = vpop.f32.mrf.mxu1 }
 0x2c4   : > { %v821_v31 = vpop.f32.mrf.mxu2 }
 0x2c5   : > { %v846_v32 = vpack.c.bf16 %v821_v31, %v821_v31 }
 0x2c7   : > { %1180 = vmatmul.msk.bf16.vlgmr.msrb.gmra.mxu2 %vm638_vm1, %v846_v32 }
 0x2cc   : > { %v823_v33 = vpop.f32.mrf.mxu2  ;;  %v840_v34 = vpop.f32.mrf.mxu3 }
 0x2cd   : > { %v847_v35 = vpack.c.bf16 %v840_v34, %v840_v34 }
 0x2cf   : > { %1181 = vmatmul.msk.bf16.vlgmr.msrb.gmra.mxu3 %vm638_vm1, %v847_v35 }
 0x2d4   : > { %v842_v36 = vpop.f32.mrf.mxu3 }
 0x332   : > { %v867_v37 = vpop.f32.mrf.mxu0 }
 0x333   : > { %v928_v43 = vsel %vm266_vm0, %v867_v37, 0.0 }
 0x33a   : > { %v869_v38 = vpop.f32.mrf.mxu0  ;;  %v886_v39 = vpop.f32.mrf.mxu1 }
 0x33b   : > { %v929_v42 = vsel %vm266_vm0, %v886_v39, 0.0 }
 0x33c   : > { %v930_v45 = vadd.f32 %v929_v42, %v928_v43 }
 0x342   : > { %v888_v40 = vpop.f32.mrf.mxu1 }
 0x34a   : > { %v905_v41 = vpop.f32.mrf.mxu2 }
 0x34b   : > { %v931_v44 = vsel %vm266_vm0, %v905_v41, 0.0 }
 0x34c   : > { %v932_v46 = vadd.f32 %v931_v44, %v930_v45 }
 0x352   : > { %v907_v47 = vpop.f32.mrf.mxu2  ;;  %v924_v48 = vpop.f32.mrf.mxu3 }
 0x353   : > { %v933_v50 = vsel %vm266_vm0, %v924_v48, 0.0 }
 0x354   : > { %v934_v51 = vadd.f32 %v933_v50, %v932_v46 }
 0x356   : > { %v939_v52 = vadd.f32 %v1261_v49, %v934_v51 }
 0x358   : > { %940 = vst.msk [vmem:[%s215_s22] sm:$0xff] %vm266_vm0, %v939_v52 }
 0x359   : > { %1305 = shalt.err (!%p1302_p3)
}
 0x35a   : > { %1210 = dma.vmem_to_hbm [thread:$0]  (%p1410_p5), %s955_s17, 128, %s957_s25, %s942_s26   ;;  %v926_v53 = vpop.f32.mrf.mxu3 }
 0x35b PF: > { %p1216_p4 = scmp.ge.s32.totalorder %s1340_s21, 2  ;;  %s968_s10 = sand.u32 1, %s1328_s18  }
 0x35c   : > { %s969_s13 = scalar_lea.sflag [#allocation3], %s968_s10 }
 0x35d   : > { %p1213_p7 = pnand %p1216_p4, %p1414_p6 }
 0x35f   : > { %p1214_p8 = pneg %p1213_p7 }
 0x361   : > { %1323 = dma.done.wait (%p1214_p8), %s969_s13, 128  }
 0x362   : > { %1325 = vsyncadd (%p1214_p8), %s969_s13, 4294967168  ;;  %p15_p9 = scmp.ge.s32.totalorder %s1397_s24, 4   ;;  %s1637_s18 = smov %s1332_s19 }
 0x363   : > { %s1638_s19 = smov %s1336_s20  ;;  %s1639_s20 = smov %s1408_s27 }
 0x364   : > { %s1640_s21 = smov %s1397_s24  ;;  %17 = sbr.rel (!%p15_p9) target bundleno = 3 (0x3), region = 79 }
 0x369   :  { %975 = vsyncpa [#allocation3], 1 }
 0x36a   :  { %977 = vsyncpa [#allocation3 + $0x1], 1 }

</bundles_post_ra>
